<compile_context>
chip_gen: v5e
topology: v5e:2x2
jax: 0.10.0
libtpu: 0.0.40
codegen_flags: <defaults>
</compile_context>

<pallas_src>
import functools

import jax
import jax.numpy as jnp
from jax.experimental import pallas as pl
from jax.experimental.pallas import tpu as pltpu


# ---------------------------------------------------------------------------
# helpers
# ---------------------------------------------------------------------------

def _round_up(x, m):
    return ((x + m - 1) // m) * m


def _device_tiling_policy():
    """Per-generation row-tile heuristic.
    v5e/v6e: 128 MiB VMEM, 1 TensorCore -> big row tiles (fewer grid steps,
             fewer H re-reads). v7x / unknown: 64 MiB VMEM, 2 TensorCores ->
             moderate tiles and prefer >=2 row tiles so the 'parallel' grid
             axis can be sharded across both cores."""
    try:
        kind = jax.devices()[0].device_kind.lower()
    except Exception:
        kind = ""
    if "v5" in kind or "v6" in kind:
        return 1024, 1
    return 512, 2


def _pick_row_tiling(n, row_tile, min_row_tiles=1):
    """Pick (n_pad, tn). N padding kept <=127 (A inflates as N^2)."""
    if n <= row_tile and (min_row_tiles <= 1 or n < 256):
        n_pad = _round_up(n, 8)          # single full block, sublane aligned
        return n_pad, n_pad
    n_pad = _round_up(n, 128)            # fine-grained padding of the N axis
    best = 128
    t = 256
    while t <= min(row_tile, n_pad):
        if n_pad % t == 0 and n_pad // t >= min_row_tiles:
            best = t
        t += 128
    return n_pad, best


def _pick_k_tiling(d, k_tile=512):
    if d <= k_tile:
        d_pad = _round_up(d, 128)
        return d_pad, d_pad              # single full block
    d_pad = _round_up(d, 128)
    best = 128
    t = 256
    while t <= min(k_tile, d_pad):
        if d_pad % t == 0:
            best = t
        t += 128
    return d_pad, best


def _maybe_vmem_limit(est_bytes):
    """Only raise the scoped VMEM limit when the estimate needs it (v5e default
    is 16 MiB); cap well below physical on every generation."""
    if est_bytes <= 12 * 1024 * 1024:
        return None
    return int(min(max(est_bytes + (8 << 20), 32 << 20), 100 << 20))


# ---------------------------------------------------------------------------
# kernels
# ---------------------------------------------------------------------------

def _transform_single_kernel(x_ref, w_ref, rn_ref, o_ref):
    # o = (x @ w) * rn  -- single reduction step: no accumulator scratch needed
    o_ref[...] = (jnp.dot(x_ref[...], w_ref[...],
                          preferred_element_type=jnp.float32)
                  * rn_ref[...]).astype(o_ref.dtype)


def _transform_multi_kernel(x_ref, w_ref, rn_ref, o_ref, acc_ref):
    k = pl.program_id(1)

    @pl.when(k == 0)
    def _():
        acc_ref[...] = jnp.zeros_like(acc_ref)

    acc_ref[...] += jnp.dot(x_ref[...], w_ref[...],
                            preferred_element_type=jnp.float32)

    @pl.when(k == pl.num_programs(1) - 1)
    def _():
        o_ref[...] = (acc_ref[...] * rn_ref[...]).astype(o_ref.dtype)


def _bn_epilogue(rst, rn, scale, shift, apply_leaky_relu, negative_slope):
    rst = rst * rn
    if apply_leaky_relu:
        rst = jnp.where(rst >= 0.0, rst, rst * negative_slope)
    return rst * scale + shift


def _aggregate_single_kernel(a_ref, h_ref, rn_ref, scale_ref, shift_ref, o_ref,
                             *, apply_leaky_relu, negative_slope):
    rst = jnp.dot(a_ref[...], h_ref[...], preferred_element_type=jnp.float32)
    rst = _bn_epilogue(rst, rn_ref[...], scale_ref[...], shift_ref[...],
                       apply_leaky_relu, negative_slope)
    o_ref[...] = rst.astype(o_ref.dtype)


def _aggregate_multi_kernel(a_ref, h_ref, rn_ref, scale_ref, shift_ref, o_ref,
                            acc_ref, *, apply_leaky_relu, negative_slope,
                            h_resident, tk):
    k = pl.program_id(1)

    @pl.when(k == 0)
    def _():
        acc_ref[...] = jnp.zeros_like(acc_ref)

    if h_resident:
        # H is a single resident (n_pad, c_pad) block; slice the rows matching
        # this reduction step (tk is a multiple of 128 by construction).
        start = pl.multiple_of(k * tk, 128)
        h_tile = h_ref[pl.ds(start, tk), :]
    else:
        h_tile = h_ref[...]
    acc_ref[...] += jnp.dot(a_ref[...], h_tile,
                            preferred_element_type=jnp.float32)

    @pl.when(k == pl.num_programs(1) - 1)
    def _():
        rst = _bn_epilogue(acc_ref[...], rn_ref[...], scale_ref[...],
                           shift_ref[...], apply_leaky_relu, negative_slope)
        o_ref[...] = rst.astype(o_ref.dtype)


# ---------------------------------------------------------------------------
# pallas_call wrappers
# ---------------------------------------------------------------------------

def _transform(x_pad, w_pad, rownorm_pad, *, tn, tk):
    """H = (X @ W_big) * src_norm[:, None]"""
    n_pad, d_pad = x_pad.shape
    c_pad = w_pad.shape[1]
    n_tiles, k_tiles = n_pad // tn, d_pad // tk
    itemsize = x_pad.dtype.itemsize

    est = (tn * c_pad * 4                       # f32 accumulator
           + 2 * tn * tk * itemsize             # X tiles (double buffered)
           + 2 * tk * c_pad * itemsize          # W tiles
           + 2 * tn * c_pad * itemsize          # out tiles (compute dtype)
           + 8 * tn)
    if k_tiles == 1:
        kernel, scratch = _transform_single_kernel, []
    else:
        kernel = _transform_multi_kernel
        scratch = [pltpu.VMEM((tn, c_pad), jnp.float32)]

    return pl.pallas_call(
        kernel,
        out_shape=jax.ShapeDtypeStruct((n_pad, c_pad), x_pad.dtype),
        grid=(n_tiles, k_tiles),
        in_specs=[
            pl.BlockSpec((tn, tk), lambda i, k: (i, k)),         # X tile
            pl.BlockSpec((tk, c_pad), lambda i, k: (k, 0)),      # W tile
            pl.BlockSpec((tn, 1), lambda i, k: (i, 0)),          # src row norm
        ],
        out_specs=pl.BlockSpec((tn, c_pad), lambda i, k: (i, 0)),
        scratch_shapes=scratch,
        compiler_params=pltpu.CompilerParams(
            dimension_semantics=("parallel", "arbitrary"),
            vmem_limit_bytes=_maybe_vmem_limit(est)),
    )(x_pad, w_pad, rownorm_pad)


def _aggregate(a_pad, h_pad, rownorm_pad, bn_scale, bn_shift, *,
               tn, tk, apply_leaky_relu, negative_slope, out_dtype):
    """out = (((A_w @ H) * dst_norm) [leaky_relu]) * bn_scale + bn_shift"""
    n_pad = a_pad.shape[0]
    c_pad = h_pad.shape[1]
    n_tiles, k_tiles = n_pad // tn, a_pad.shape[1] // tk
    a_item = a_pad.dtype.itemsize
    h_item = h_pad.dtype.itemsize

    base = (tn * c_pad * 4                      # f32 accumulator
            + 2 * tn * tk * a_item              # A tiles (double buffered)
            + 2 * tn * c_pad * 4                # out tiles (f32)
            + 4 * c_pad * 4                     # bn scale/shift
            + 8 * tn)
    # Resident H: constant block index -> fetched once for the whole grid
    # instead of re-streamed once per row tile (counts 2 buffers, conservative).
    h_resident_bytes = 2 * n_pad * c_pad * h_item
    budget = 40 * 1024 * 1024                   # safe on v7x's 64 MiB VMEM
    h_resident = (k_tiles > 1) and (base + h_resident_bytes <= budget)

    if k_tiles == 1:
        kernel = functools.partial(_aggregate_single_kernel,
                                   apply_leaky_relu=apply_leaky_relu,
                                   negative_slope=negative_slope)
        scratch = []
        h_spec = pl.BlockSpec((tk, c_pad), lambda i, k: (k, 0))
        est = base + 2 * tk * c_pad * h_item
    else:
        kernel = functools.partial(_aggregate_multi_kernel,
                                   apply_leaky_relu=apply_leaky_relu,
                                   negative_slope=negative_slope,
                                   h_resident=h_resident, tk=tk)
        scratch = [pltpu.VMEM((tn, c_pad), jnp.float32)]
        if h_resident:
            h_spec = pl.BlockSpec((n_pad, c_pad), lambda i, k: (0, 0))
            est = base + h_resident_bytes
        else:
            h_spec = pl.BlockSpec((tk, c_pad), lambda i, k: (k, 0))
            est = base + 2 * tk * c_pad * h_item

    return pl.pallas_call(
        kernel,
        out_shape=jax.ShapeDtypeStruct((n_pad, c_pad), out_dtype),
        grid=(n_tiles, k_tiles),
        in_specs=[
            pl.BlockSpec((tn, tk), lambda i, k: (i, k)),         # A tile (dst x src)
            h_spec,                                              # H (tile or resident)
            pl.BlockSpec((tn, 1), lambda i, k: (i, 0)),          # dst row norm
            pl.BlockSpec((1, c_pad), lambda i, k: (0, 0)),       # bn scale
            pl.BlockSpec((1, c_pad), lambda i, k: (0, 0)),       # bn shift
        ],
        out_specs=pl.BlockSpec((tn, c_pad), lambda i, k: (i, 0)),
        scratch_shapes=scratch,
        compiler_params=pltpu.CompilerParams(
            dimension_semantics=("parallel", "arbitrary"),
            vmem_limit_bytes=_maybe_vmem_limit(est)),
    )(a_pad, h_pad, rownorm_pad, bn_scale, bn_shift)


# ---------------------------------------------------------------------------
# parameter / graph preparation (done once, NOT per forward)
# ---------------------------------------------------------------------------

def prepare_progressive_gcn_params(weights, in_feats_len, out_feats_len,
                                   bn_params, task_specific_id=-1, eps=1e-5,
                                   k_tile=512):
    """Builds the zero-padded block weight and folds the eval-mode per-task
    BatchNorms into a single per-channel affine (scale, shift)."""
    if task_specific_id is None or task_specific_id < 0:
        k = len(weights)
    else:
        k = task_specific_id + 1

    d_used = int(in_feats_len[k - 1])
    c_used = int(sum(out_feats_len[:k]))

    d_pad, d_tile = _pick_k_tiling(d_used, k_tile)
    # lane-dense output axis; 256-aligned when wide to fully fill the 2x256^2
    # MXU on v6e/v7x
    c_pad = _round_up(c_used, 128) if c_used <= 128 else _round_up(c_used, 256)

    # block weight: column block i holds W_i in rows [:L_i], zeros below
    w_big = jnp.zeros((d_pad, c_pad), jnp.float32)
    col = 0
    for w, L, O in zip(weights[:k], in_feats_len[:k], out_feats_len[:k]):
        w_big = w_big.at[:L, col:col + O].set(w.astype(jnp.float32))
        col += O

    # eval-mode BatchNorm1d -> per-channel affine, concatenated over tasks
    scale = jnp.zeros((c_pad,), jnp.float32)
    shift = jnp.zeros((c_pad,), jnp.float32)
    col = 0
    for (gamma, beta, mean, var), O in zip(bn_params[:k], out_feats_len[:k]):
        s = gamma.astype(jnp.float32) / jnp.sqrt(var.astype(jnp.float32) + eps)
        scale = scale.at[col:col + O].set(s)
        shift = shift.at[col:col + O].set(beta.astype(jnp.float32)
                                          - mean.astype(jnp.float32) * s)
        col += O

    return dict(w_big=w_big, bn_scale=scale[None, :], bn_shift=shift[None, :],
                d_used=d_used, d_pad=d_pad, d_tile=d_tile,
                c_used=c_used, c_pad=c_pad)


def compute_degree_norms(adj, norm="both"):
    """Per-graph degree normalisations (cache these; they do not change per
    forward). `adj` may be the binary or the weighted adjacency — only its
    nonzero pattern is used (DGL degrees count edges, not weights)."""
    n = adj.shape[0]
    adjb = (adj != 0).astype(jnp.float32)
    if norm in ("left", "both"):
        out_degs = jnp.maximum(adjb.sum(axis=0), 1.0)       # out-degree of src
        src_norm = out_degs ** -0.5 if norm == "both" else 1.0 / out_degs
    else:
        src_norm = jnp.ones((n,), jnp.float32)
    if norm in ("right", "both"):
        in_degs = jnp.maximum(adjb.sum(axis=1), 1.0)        # in-degree of dst
        dst_norm = in_degs ** -0.5 if norm == "both" else 1.0 / in_degs
    else:
        dst_norm = jnp.ones((n,), jnp.float32)
    return src_norm, dst_norm


# ---------------------------------------------------------------------------
# forward
# ---------------------------------------------------------------------------

def progressive_graph_conv_forward(feat, adj_weighted, params, *,
                                   norm="both", activation=None,
                                   negative_slope=0.2,
                                   src_norm=None, dst_norm=None,
                                   compute_dtype=jnp.bfloat16,
                                   row_tile=None):
    """JAX/Pallas equivalent of ProgressiveGraphConv.forward (inference).

    feat:         [N, >=D] node features
    adj_weighted: [N, N] dense (dst x src) adjacency carrying edge weights
                  (binary adjacency if no edge_weight is used)
    params:       output of prepare_progressive_gcn_params
    src_norm/dst_norm: optional cached per-graph degree norms
    compute_dtype: operand dtype for both matmuls (bf16 supported on v5e/v6e/
                  v7x MXUs and halves the N^2 adjacency HBM traffic);
                  accumulation, norms, activation and BN affine stay float32.
    """
    n = feat.shape[0]
    d_used, d_pad, d_tile = params["d_used"], params["d_pad"], params["d_tile"]
    c_used = params["c_used"]

    if row_tile is None:
        row_tile, min_tiles = _device_tiling_policy()
    else:
        min_tiles = 1
    n_pad, tn = _pick_row_tiling(n, row_tile, min_tiles)

    # ---- degree norms: use cached values when provided; otherwise derive
    # them from adj_weighted's nonzero pattern (no second dense adjacency) ----
    if src_norm is None or dst_norm is None:
        s, d = compute_degree_norms(adj_weighted, norm)
        src_norm = s if src_norm is None else src_norm
        dst_norm = d if dst_norm is None else dst_norm

    # ---- explicit zero padding, built ONCE and directly in compute_dtype ----
    x_pad = jnp.zeros((n_pad, d_pad), compute_dtype).at[:n, :d_used].set(
        feat[:, :d_used].astype(compute_dtype))
    a_pad = jnp.zeros((n_pad, n_pad), compute_dtype).at[:n, :n].set(
        adj_weighted.astype(compute_dtype))
    src_norm_pad = jnp.zeros((n_pad, 1), jnp.float32).at[:n, 0].set(
        src_norm.astype(jnp.float32))
    dst_norm_pad = jnp.zeros((n_pad, 1), jnp.float32).at[:n, 0].set(
        dst_norm.astype(jnp.float32))
    w_big = params["w_big"].astype(compute_dtype)

    # ---- kernel 1: per-task prefix matmuls as one block matmul (+ left norm) ----
    h = _transform(x_pad, w_big, src_norm_pad, tn=tn, tk=d_tile)

    # ---- kernel 2: graph aggregation + right norm + activation + BN affine ----
    out_pad = _aggregate(a_pad, h, dst_norm_pad,
                         params["bn_scale"], params["bn_shift"],
                         tn=tn, tk=tn,
                         apply_leaky_relu=(activation == "leaky_relu"),
                         negative_slope=float(negative_slope),
                         out_dtype=jnp.float32)

    return out_pad[:n, :c_used]


# ---------------------------------------------------------------------------
# pure-jnp reference mirroring the PyTorch module
# ---------------------------------------------------------------------------

def _reference_forward(feat, adj_weighted, adj_binary, weights, in_feats_len,
                       out_feats_len, bn_params, norm="both", activation=None,
                       negative_slope=0.2, eps=1e-5):
    adjb = adj_binary.astype(jnp.float32)
    feat_src = feat.astype(jnp.float32)
    if norm in ("left", "both"):
        degs = jnp.maximum(adjb.sum(axis=0), 1.0)
        nrm = degs ** -0.5 if norm == "both" else 1.0 / degs
        feat_src = feat_src * nrm[:, None]
    # in_feats > out_feats branch: transform, then aggregate
    transformed = [feat_src[:, :L] @ w for w, L in zip(weights, in_feats_len)]
    h = jnp.concatenate(transformed, axis=-1)
    rst = adj_weighted.astype(jnp.float32) @ h
    if norm in ("right", "both"):
        degs = jnp.maximum(adjb.sum(axis=1), 1.0)
        nrm = degs ** -0.5 if norm == "both" else 1.0 / degs
        rst = rst * nrm[:, None]
    if activation == "leaky_relu":
        rst = jnp.where(rst >= 0, rst, negative_slope * rst)
    outs, off = [], 0
    for (gamma, beta, mean, var), O in zip(bn_params, out_feats_len):
        chunk = rst[:, off:off + O]
        outs.append((chunk - mean) / jnp.sqrt(var + eps) * gamma + beta)
        off += O
    return jnp.concatenate(outs, axis=-1)


# ---------------------------------------------------------------------------
# demo / self-test
# ---------------------------------------------------------------------------

if __name__ == "__main__":
    key = jax.random.PRNGKey(0)
    keys = jax.random.split(key, 16)

    # module config: two continual-learning expansions
    n_nodes = 24
    in_feats_delta = [20, 12]                       # -> in_feats_len = [20, 32]
    out_feats_len = [8, 8]                          # -> out_feats = 16 (< in_feats)
    in_feats_len = []
    for d in in_feats_delta:
        in_feats_len.append(d if not in_feats_len else in_feats_len[-1] + d)
    D = in_feats_len[-1]
    C = sum(out_feats_len)

    # per-task weights (xavier-uniform style init, [L_i, O_i] layout as in the module)
    weights = []
    for t, (L, O) in enumerate(zip(in_feats_len, out_feats_len)):
        bound = (6.0 / (L + O)) ** 0.5
        weights.append(jax.random.uniform(keys[t], (L, O), minval=-bound,
                                          maxval=bound, dtype=jnp.float32))

    # per-task eval-mode BatchNorm1d parameters (gamma, beta, running_mean, running_var)
    bn_params = []
    for t, O in enumerate(out_feats_len):
        kk = jax.random.split(keys[4 + t], 4)
        gamma = 1.0 + 0.1 * jax.random.normal(kk[0], (O,), jnp.float32)
        beta = 0.1 * jax.random.normal(kk[1], (O,), jnp.float32)
        mean = 0.1 * jax.random.normal(kk[2], (O,), jnp.float32)
        var = jax.random.uniform(kk[3], (O,), minval=0.5, maxval=1.5, dtype=jnp.float32)
        bn_params.append((gamma, beta, mean, var))

    # random directed graph with self-loops; dst x src adjacency + edge weights
    adj_rand = jax.random.uniform(keys[8], (n_nodes, n_nodes), dtype=jnp.float32)
    adj_binary = (adj_rand < 0.25).astype(jnp.float32)
    adj_binary = jnp.maximum(adj_binary, jnp.eye(n_nodes, dtype=jnp.float32))
    edge_w = jax.random.uniform(keys[9], (n_nodes, n_nodes), minval=0.5,
                                maxval=1.5, dtype=jnp.float32)
    adj_weighted = adj_binary * edge_w

    feat = jax.random.normal(keys[10], (n_nodes, D), dtype=jnp.float32)

    # prepared once per task expansion / per graph, not per forward
    params = prepare_progressive_gcn_params(weights, in_feats_len, out_feats_len,
                                            bn_params, task_specific_id=-1)
    src_norm, dst_norm = compute_degree_norms(adj_binary, norm="both")

    ref = _reference_forward(feat, adj_weighted, adj_binary, weights,
                             in_feats_len, out_feats_len, bn_params, norm="both")

    # float32 operand run (reference-exact path)
    out_f32 = progressive_graph_conv_forward(
        feat, adj_weighted, params, norm="both", activation=None,
        src_norm=src_norm, dst_norm=dst_norm, compute_dtype=jnp.float32)
    out_f32 = jax.block_until_ready(out_f32)
    assert out_f32.shape == (n_nodes, C)
    assert jnp.allclose(out_f32, ref, atol=1e-4, rtol=1e-4), \
        float(jnp.max(jnp.abs(out_f32 - ref)))

    # default bfloat16 operand run (recommended on v5e/v6e/v7x: halves the
    # O(N^2) adjacency HBM traffic; accumulation/epilogue stay float32)
    out_bf16 = progressive_graph_conv_forward(
        feat, adj_weighted, params, norm="both", activation=None,
        src_norm=src_norm, dst_norm=dst_norm)
    out_bf16 = jax.block_until_ready(out_bf16)
    assert jnp.allclose(out_bf16, ref, atol=1e-1, rtol=1e-1)

    # leaky_relu activation branch (float32, exercises the fused epilogue)
    out_act = progressive_graph_conv_forward(
        feat, adj_weighted, params, norm="both", activation="leaky_relu",
        negative_slope=0.2, src_norm=src_norm, dst_norm=dst_norm,
        compute_dtype=jnp.float32)
    out_act = jax.block_until_ready(out_act)
    ref_act = _reference_forward(feat, adj_weighted, adj_binary, weights,
                                 in_feats_len, out_feats_len, bn_params,
                                 norm="both", activation="leaky_relu",
                                 negative_slope=0.2)
    assert jnp.allclose(out_act, ref_act, atol=1e-4, rtol=1e-4)

    print("KERNEL_OK")
</pallas_src>

<mosaic_0001>
module attributes {stable_mosaic.version = 11 : i64} {
  func.func @_transform_single_kernel(%arg0: i32, %arg1: i32, %arg2: memref<24x128xf32, #tpu.memory_space<vmem>>, %arg3: memref<128x128xf32, #tpu.memory_space<vmem>>, %arg4: memref<24x1xf32, #tpu.memory_space<vmem>>, %arg5: memref<24x128xf32, #tpu.memory_space<vmem>>) attributes {dimension_semantics = [#tpu.dimension_semantics<parallel>, #tpu.dimension_semantics<arbitrary>], iteration_bounds = array<i64: 1, 1>, scalar_prefetch = 0 : i64, scratch_operands = 0 : i64, tpu.core_type = #tpu.core_type<tc>, window_params = [{transform_indices = @transform_0, window_bounds = array<i64: 24, 128>}, {transform_indices = @transform_1, window_bounds = array<i64: 128, 128>}, {transform_indices = @transform_2, window_bounds = array<i64: 24, 1>}, {transform_indices = @transform_3, window_bounds = array<i64: 24, 128>}]} {
    %c0 = arith.constant 0 : index
    %c0_0 = arith.constant 0 : index
    %0 = vector.load %arg2[%c0, %c0_0] : memref<24x128xf32, #tpu.memory_space<vmem>>, vector<24x128xf32>
    %c0_1 = arith.constant 0 : index
    %c0_2 = arith.constant 0 : index
    %1 = vector.load %arg3[%c0_1, %c0_2] : memref<128x128xf32, #tpu.memory_space<vmem>>, vector<128x128xf32>
    %cst = arith.constant dense<0.000000e+00> : vector<24x128xf32>
    %2 = tpu.matmul %0, %1, %cst {dimension_numbers = #tpu.dot_dimension_numbers<[1], [0], [0], [1], [0, 0, 1, 1], [], []>} : vector<24x128xf32>, vector<128x128xf32>, vector<24x128xf32> -> vector<24x128xf32>
    %c0_3 = arith.constant 0 : index
    %c0_4 = arith.constant 0 : index
    %3 = vector.load %arg4[%c0_3, %c0_4] : memref<24x1xf32, #tpu.memory_space<vmem>>, vector<24x1xf32>
    %4 = vector.broadcast %3 : vector<24x1xf32> to vector<24x128xf32>
    %5 = arith.mulf %2, %4 : vector<24x128xf32>
    %c0_5 = arith.constant 0 : index
    %c0_6 = arith.constant 0 : index
    %6 = vector.load %arg5[%c0_5, %c0_6] : memref<24x128xf32, #tpu.memory_space<vmem>>, vector<24x128xf32>
    tpu.vector_store %arg5[%c0_5, %c0_6], %5 {strides = array<i32>} : memref<24x128xf32, #tpu.memory_space<vmem>>, vector<24x128xf32>,
    return
  }
  func.func @transform_0(%arg0: i32, %arg1: i32) -> (i32, i32) {
    %c0_i32 = arith.constant 0 : i32
    return %arg0, %arg1 : i32, i32
  }
  func.func @transform_1(%arg0: i32, %arg1: i32) -> (i32, i32) {
    %c0_i32 = arith.constant 0 : i32
    %c0_i32_0 = arith.constant 0 : i32
    return %arg1, %c0_i32 : i32, i32
  }
  func.func @transform_2(%arg0: i32, %arg1: i32) -> (i32, i32) {
    %c0_i32 = arith.constant 0 : i32
    %c0_i32_0 = arith.constant 0 : i32
    return %arg0, %c0_i32 : i32, i32
  }
  func.func @transform_3(%arg0: i32, %arg1: i32) -> (i32, i32) {
    %c0_i32 = arith.constant 0 : i32
    %c0_i32_0 = arith.constant 0 : i32
    return %arg0, %c0_i32 : i32, i32
  }
}

</mosaic_0001>

<bundles_post_ra>
// kernel: tpu_custom_call.1
= control target key start
LH: loop header
LB: loop body
LE: loop exit
PB: predicated region body
PF: predicated region fallthrough
CT: control target
= control target key end

     0   :  { %8 = vsyncpa [#allocation3], 0  ;;  %s265_s0 = inlined_call_operand.vmem [shape: f32[24,128], index: 0, kind: input, shape index: {}]   ;;  %s266_s1 = inlined_call_operand.hbm [shape: f32[128,128], index: 1, kind: input, shape index: {}]   ;;  %s267_s2 = inlined_call_operand.vmem [shape: f32[24,1], index: 2, kind: input, shape index: {}]   ;;  %s268_s3 = inlined_call_operand.hbm [shape: f32[24,128], index: 3, kind: output, shape index: {}]  }
   0x1   :  { %9 = vsyncpa [#allocation4], 0  ;;  %s16_s14 = sshll.u32 %s266_s1, 4  ;;  %s210_s15 = smov [#allocation2]   ;;  %s17_s14 = int_to_ptr.hbm [resolvable:$true] %s16_s14 }
   0x2   :  { %s18_s16 = sshll.u32 %s210_s15, 4  ;;  %s211_s17 = smov 128   ;;  %s19_s16 = int_to_ptr.vmem [resolvable:$true] %s18_s16 }
   0x3   :  { %s212_s18 = smov 8  }
   0x4   :  { %24 = dma.hbm_to_vmem [thread:$0]  %s17_s14, 2048, %s19_s16, [#allocation3], %s211_s17, %s211_s17, %s212_s18  }
   0x5   :  { %206 = dma.done.wait [#allocation3], 2048  }
   0x6   :  { %207 = vsyncadd [#allocation3], 4294965248  ;;  %v49_v0 = vld [vmem:[#allocation2 + $0x78] sm:$0xff]  ;;  %v48_v1 = vld [vmem:[#allocation2 + $0x70] sm:$0xff]  ;;  %v213_v3 = vmov 0   ;;  %s214_s29 = smov [#allocation5]  }
   0x7   :  { %50 = vmatpush.msra.mxu0 %v49_v0  ;;  %119 = vmatpush.msra.mxu1 %v49_v0  ;;  %v47_v2 = vld [vmem:[#allocation2 + $0x68] sm:$0xff]  ;;  %v46_v4 = vld [vmem:[#allocation2 + $0x60] sm:$0xff]  ;;  %v45_v5 = vld [vmem:[#allocation2 + $0x58] sm:$0xff]  ;;  %s104_s30 = sshll.u32 %s214_s29, 4  ;;  %s105_s30 = int_to_ptr.vmem [resolvable:$true] %s104_s30 }
   0x8   :  { %120 = vmatpush.msra.mxu2 %v49_v0  ;;  %156 = vset.pattern.permute.xlu0 %v213_v3  ;;  %v76_v6 = vld [vmem:[%s267_s2] sm:$0xff]  ;;  %v78_v7 = vld [vmem:[%s267_s2 + $0x10] sm:$0xff]  ;;  %v43_v9 = vld [vmem:[#allocation2 + $0x48] sm:$0xff] }
   0x9   :  { %51 = vmatpush.msra.mxu0 %v48_v1  ;;  %121 = vmatpush.msra.mxu1 %v48_v1  ;;  %v44_v8 = vld [vmem:[#allocation2 + $0x50] sm:$0xff]  ;;  %v42_v10 = vld [vmem:[#allocation2 + $0x40] sm:$0xff]  ;;  %v77_v11 = vld [vmem:[%s267_s2 + $0x8] sm:$0xff] }
   0xa   :  { %122 = vmatpush.msra.mxu2 %v48_v1  ;;  %157 = vset.pattern.permute.xlu1 %v213_v3  ;;  %v41_v12 = vld [vmem:[#allocation2 + $0x38] sm:$0xff]  ;;  %v40_v13 = vld [vmem:[#allocation2 + $0x30] sm:$0xff]  ;;  %v39_v14 = vld [vmem:[#allocation2 + $0x28] sm:$0xff] }
   0xb   :  { %52 = vmatpush.msra.mxu0 %v47_v2  ;;  %123 = vmatpush.msra.mxu1 %v47_v2  ;;  %v38_v15 = vld [vmem:[#allocation2 + $0x20] sm:$0xff]  ;;  %v37_v16 = vld [vmem:[#allocation2 + $0x18] sm:$0xff]  ;;  %v36_v17 = vld [vmem:[#allocation2 + $0x10] sm:$0xff] }
   0xc   :  { %124 = vmatpush.msra.mxu2 %v47_v2  ;;  %81 = vperm.xlu0 %156, %v76_v6   ;;  %v35_v18 = vld [vmem:[#allocation2 + $0x8] sm:$0xff]  ;;  %v34_v19 = vld [vmem:[#allocation2] sm:$0xff]  ;;  %v33_v22 = vld [vmem:[%s265_s0 + $0x10] sm:$0xff] }
   0xd   :  { %53 = vmatpush.msra.mxu0 %v46_v4  ;;  %125 = vmatpush.msra.mxu1 %v46_v4  ;;  %v31_v20 = vld [vmem:[%s265_s0] sm:$0xff]  ;;  %v32_v21 = vld [vmem:[%s265_s0 + $0x8] sm:$0xff]  ;;  %s106_s0 = sshll.u32 %s268_s3, 4  ;;  %s107_s0 = int_to_ptr.hbm [resolvable:$true] %s106_s0 }
   0xe   :  { %126 = vmatpush.msra.mxu2 %v46_v4  ;;  %91 = vperm.xlu1 %157, %v78_v7  }
   0xf   :  { %54 = vmatpush.msra.mxu0 %v45_v5  ;;  %127 = vmatpush.msra.mxu1 %v45_v5 }
  0x10   :  { %128 = vmatpush.msra.mxu2 %v45_v5 }
  0x11   :  { %55 = vmatpush.msra.mxu0 %v44_v8  ;;  %129 = vmatpush.msra.mxu1 %v44_v8 }
  0x12   :  { %130 = vmatpush.msra.mxu2 %v44_v8 }
  0x13   :  { %56 = vmatpush.msra.mxu0 %v43_v9  ;;  %131 = vmatpush.msra.mxu1 %v43_v9 }
  0x14   :  { %132 = vmatpush.msra.mxu2 %v43_v9  ;;  %86 = vperm.xlu0 %156, %v77_v11  }
  0x15   :  { %57 = vmatpush.msra.mxu0 %v42_v10  ;;  %133 = vmatpush.msra.mxu1 %v42_v10 }
  0x16   :  { %134 = vmatpush.msra.mxu2 %v42_v10 }
  0x17   :  { %58 = vmatpush.msra.mxu0 %v41_v12  ;;  %135 = vmatpush.msra.mxu1 %v41_v12 }
  0x18   :  { %136 = vmatpush.msra.mxu2 %v41_v12 }
  0x19   :  { %59 = vmatpush.msra.mxu0 %v40_v13  ;;  %137 = vmatpush.msra.mxu1 %v40_v13 }
  0x1a   :  { %138 = vmatpush.msra.mxu2 %v40_v13 }
  0x1b   :  { %60 = vmatpush.msra.mxu0 %v39_v14  ;;  %139 = vmatpush.msra.mxu1 %v39_v14 }
  0x1c   :  { %140 = vmatpush.msra.mxu2 %v39_v14 }
  0x1d   :  { %61 = vmatpush.msra.mxu0 %v38_v15  ;;  %141 = vmatpush.msra.mxu1 %v38_v15 }
  0x1e   :  { %142 = vmatpush.msra.mxu2 %v38_v15 }
  0x1f   :  { %62 = vmatpush.msra.mxu0 %v37_v16  ;;  %143 = vmatpush.msra.mxu1 %v37_v16 }
  0x20   :  { %144 = vmatpush.msra.mxu2 %v37_v16 }
  0x21   :  { %63 = vmatpush.msra.mxu0 %v36_v17  ;;  %145 = vmatpush.msra.mxu1 %v36_v17 }
  0x22   :  { %146 = vmatpush.msra.mxu2 %v36_v17 }
  0x23   :  { %64 = vmatpush.msra.mxu0 %v35_v18  ;;  %147 = vmatpush.msra.mxu1 %v35_v18 }
  0x24   :  { %148 = vmatpush.msra.mxu2 %v35_v18 }
  0x25   :  { %65 = vmatpush.msra.mxu0 %v34_v19  ;;  %149 = vmatpush.msra.mxu1 %v34_v19 }
  0x26   :  { %150 = vmatpush.msra.mxu2 %v34_v19  ;;  %66 = vmatmul.f32.vlgmr.msra.gmra.mxu0 %v31_v20 }
  0x27   :  { %69 = vmatmul.f32.vlgmr.msra.gmra.mxu1 %v32_v21  ;;  %72 = vmatmul.f32.vlgmr.msra.gmra.mxu2 %v33_v22 }
  0x7e   :  { %v82_v23 = vpop.permute.xlu0 %81 }
  0x80   :  { %v92_v29 = vpop.permute.xlu1 %91 }
  0x86   :  { %v87_v25 = vpop.permute.xlu0 %86 }
  0xa3   :  { %v67_v24 = vpop.f32.mrf.mxu0 }
  0xa4   :  { %v94_v26 = vmul.f32 %v82_v23, %v67_v24  ;;  %v70_v27 = vpop.f32.mrf.mxu1 }
  0xa5   :  { %v95_v28 = vmul.f32 %v87_v25, %v70_v27 }
  0xa6   :  { %97 = vst [vmem:[#allocation5] sm:$0xff] %v94_v26 }
  0xa7   :  { %98 = vst [vmem:[#allocation5 + $0x8] sm:$0xff] %v95_v28 }
  0xaa   :  { %v73_v30 = vpop.f32.mrf.mxu2 }
  0xab   :  { %v96_v31 = vmul.f32 %v92_v29, %v73_v30 }
  0xad   :  { %99 = vst [vmem:[#allocation5 + $0x10] sm:$0xff] %v96_v31 }
  0xae   :  { %112 = dma.vmem_to_hbm [thread:$0]  %s105_s30, 384, %s107_s0, [#allocation4], %s211_s17, %s211_s17, %s212_s18  }
  0xaf   :  { %208 = dma.done.wait [#allocation4], 384  }
  0xb0   :  { %209 = vsyncadd [#allocation4], 4294966912 }
  0xb1   :  { %117 = vsyncpa [#allocation3], 1 }
  0xb2   :  { %118 = vsyncpa [#allocation4], 1 }

</bundles_post_ra>
